<compile_context>
chip_gen: v7x
topology: tpu7x:2x2x1
jax: 0.10.0
libtpu: 0.0.40
codegen_flags: <defaults>
</compile_context>

<pallas_src>
import functools

import jax
import jax.numpy as jnp
from jax import lax
from jax.experimental import pallas as pl
from jax.experimental.pallas import tpu as pltpu

HIDDEN = 64
IN_FEATURES = 3
CHUNK = 256  # lane-chunk the kernel walks inside one grid step


def _round_up(a, b):
    return ((a + b - 1) // b) * b


def pinn_kernel(xT_ref, w1_ref, b1_ref, w2_ref, b2_ref, w3_ref, b3_ref, oT_ref,
                *, chunk, act_dtype):
    # Weights/biases are tiny and held resident across grid steps; load once.
    w1 = w1_ref[...]            # (64, 3)
    b1 = b1_ref[...]            # (64, 1)
    w2 = w2_ref[...]            # (64, 64)
    b2 = b2_ref[...]            # (64, 1)
    w3 = w3_ref[...]            # (1, 64)
    b3 = b3_ref[...]            # (1, 1)

    n_chunks = xT_ref.shape[1] // chunk

    def body(c, carry):
        off = pl.multiple_of(c * chunk, chunk)
        xc = xT_ref[:, pl.ds(off, chunk)]                      # (3, chunk)

        # Layer 1: K=3 contraction as VPU broadcast FMAs (MXU would be ~idle).
        pre1 = (
            w1[:, 0:1] * xc[0:1, :]
            + w1[:, 1:2] * xc[1:2, :]
            + w1[:, 2:3] * xc[2:3, :]
            + b1
        )                                                      # (64, chunk)
        h1 = jnp.tanh(pre1.astype(act_dtype))

        # Layer 2: 64x64 matmul on the MXU, f32 accumulate.
        pre2 = jnp.dot(w2.astype(act_dtype), h1,
                       preferred_element_type=jnp.float32) + b2
        h2 = jnp.tanh(pre2.astype(act_dtype))                  # (64, chunk)

        # Layer 3: (1,64)@(64,chunk) -> lane-dense (1, chunk) output row.
        out = jnp.dot(w3.astype(act_dtype), h2,
                      preferred_element_type=jnp.float32) + b3
        oT_ref[:, pl.ds(off, chunk)] = out.astype(oT_ref.dtype)
        return carry

    lax.fori_loop(0, n_chunks, body, None, unroll=True)


def pinn_forward_feature_major(xT, params, *, tm=2048,
                               activation_dtype=jnp.float32):
    """Zero-copy entry point: xT is feature-major [3, N] float32."""
    F, N = xT.shape
    assert F == IN_FEATURES
    w1, b1 = params["w1"], params["b1"]   # (64, 3), (64, 1)
    w2, b2 = params["w2"], params["b2"]   # (64, 64), (64, 1)
    w3, b3 = params["w3"], params["b3"]   # (1, 64), (1, 1)

    # Pick the batch tile: big enough to amortize per-step overhead, but keep
    # >= 2 grid steps when the batch allows it so v7x can use both TensorCores.
    tm = max(CHUNK, min(tm, _round_up(pl.cdiv(max(N, 1), 2), CHUNK)))
    n_tiles = pl.cdiv(N, tm)              # trailing block may be ragged

    kernel = functools.partial(pinn_kernel, chunk=min(CHUNK, tm),
                               act_dtype=activation_dtype)

    cost = pl.CostEstimate(
        flops=2 * N * (IN_FEATURES * HIDDEN + HIDDEN * HIDDEN + HIDDEN * 1),
        transcendentals=2 * HIDDEN * N,
        bytes_accessed=4 * (N * IN_FEATURES + N * 1
                            + (IN_FEATURES + 1) * HIDDEN
                            + (HIDDEN + 1) * HIDDEN
                            + HIDDEN + 1),
    )

    outT = pl.pallas_call(
        kernel,
        out_shape=jax.ShapeDtypeStruct((1, N), jnp.float32),
        grid_spec=pltpu.PrefetchScalarGridSpec(
            num_scalar_prefetch=0,
            grid=(n_tiles,),
            in_specs=[
                pl.BlockSpec((IN_FEATURES, tm), lambda i: (0, i)),   # x^T tile
                pl.BlockSpec((HIDDEN, IN_FEATURES), lambda i: (0, 0)),  # w1
                pl.BlockSpec((HIDDEN, 1), lambda i: (0, 0)),            # b1
                pl.BlockSpec((HIDDEN, HIDDEN), lambda i: (0, 0)),       # w2
                pl.BlockSpec((HIDDEN, 1), lambda i: (0, 0)),            # b2
                pl.BlockSpec((1, HIDDEN), lambda i: (0, 0)),            # w3
                pl.BlockSpec((1, 1), lambda i: (0, 0)),                 # b3
            ],
            out_specs=pl.BlockSpec((1, tm), lambda i: (0, i)),          # lane-dense
        ),
        compiler_params=pltpu.CompilerParams(
            dimension_semantics=("parallel",),
        ),
        cost_estimate=cost,
    )(xT, w1, b1, w2, b2, w3, b3)

    return outT.reshape(N, 1)


def pinn_forward(x, params, *, tm=2048, activation_dtype=jnp.float32):
    """x: [N, 3] float32 (PyTorch layout). Transposes once to feature-major."""
    N, F = x.shape
    assert F == IN_FEATURES
    # Single transpose (no pad); callers that already hold feature-major data
    # should call pinn_forward_feature_major directly and skip this copy.
    return pinn_forward_feature_major(x.T, params, tm=tm,
                                      activation_dtype=activation_dtype)


def init_params(key):
    """Synthetic init with PyTorch nn.Linear layout: W is (out, in), bias stored (out, 1)."""
    k1, k2, k3, k4, k5, k6 = jax.random.split(key, 6)
    w1 = jax.random.normal(k1, (HIDDEN, IN_FEATURES), jnp.float32) * 0.1
    b1 = jax.random.normal(k2, (HIDDEN, 1), jnp.float32) * 0.1
    w2 = jax.random.normal(k3, (HIDDEN, HIDDEN), jnp.float32) * 0.1
    b2 = jax.random.normal(k4, (HIDDEN, 1), jnp.float32) * 0.1
    w3 = jax.random.normal(k5, (1, HIDDEN), jnp.float32) * 0.1
    b3 = jax.random.normal(k6, (1, 1), jnp.float32) * 0.1
    return dict(w1=w1, b1=b1, w2=w2, b2=b2, w3=w3, b3=b3)


def pinn_reference(x, p):
    h1 = jnp.tanh(x @ p["w1"].T + p["b1"][:, 0])
    h2 = jnp.tanh(h1 @ p["w2"].T + p["b2"][:, 0])
    return h2 @ p["w3"].T + p["b3"][:, 0]


if __name__ == "__main__":
    key = jax.random.PRNGKey(0)
    pkey, xkey = jax.random.split(key)
    params = init_params(pkey)

    # Non-multiple batch to exercise the ragged trailing block; with the v7x
    # tile cap this gives 2 grid steps (tm=256) and one partial block.
    N = 300
    x = jax.random.normal(xkey, (N, IN_FEATURES), jnp.float32)

    out = jax.jit(pinn_forward)(x, params)
    out = jax.block_until_ready(out)

    ref = pinn_reference(x, params)
    assert out.shape == (N, 1)
    assert jnp.allclose(out, ref, atol=1e-5, rtol=1e-5)

    print("KERNEL_OK")
</pallas_src>

<mosaic_0001>
module attributes {stable_mosaic.version = 11 : i64} {
  func.func @pinn_kernel(%arg0: i32, %arg1: memref<3x256xf32, #tpu.memory_space<vmem>>, %arg2: memref<64x3xf32, #tpu.memory_space<vmem>>, %arg3: memref<64x1xf32, #tpu.memory_space<vmem>>, %arg4: memref<64x64xf32, #tpu.memory_space<vmem>>, %arg5: memref<64x1xf32, #tpu.memory_space<vmem>>, %arg6: memref<1x64xf32, #tpu.memory_space<vmem>>, %arg7: memref<1x1xf32, #tpu.memory_space<vmem>>, %arg8: memref<1x256xf32, #tpu.memory_space<vmem>>) attributes {dimension_semantics = [#tpu.dimension_semantics<parallel>], iteration_bounds = array<i64: 2>, scalar_prefetch = 0 : i64, scratch_operands = 0 : i64, tpu.core_type = #tpu.core_type<tc>, window_params = [{transform_indices = @transform_0, window_bounds = array<i64: 3, 256>}, {pipeline_mode = #tpu.pipeline_mode<synchronous>, transform_indices = @transform_1, window_bounds = array<i64: 64, 3>}, {pipeline_mode = #tpu.pipeline_mode<synchronous>, transform_indices = @transform_2, window_bounds = array<i64: 64, 1>}, {pipeline_mode = #tpu.pipeline_mode<synchronous>, transform_indices = @transform_3, window_bounds = array<i64: 64, 64>}, {pipeline_mode = #tpu.pipeline_mode<synchronous>, transform_indices = @transform_4, window_bounds = array<i64: 64, 1>}, {pipeline_mode = #tpu.pipeline_mode<synchronous>, transform_indices = @transform_5, window_bounds = array<i64: 1, 64>}, {pipeline_mode = #tpu.pipeline_mode<synchronous>, transform_indices = @transform_6, window_bounds = array<i64: 1, 1>}, {transform_indices = @transform_7, window_bounds = array<i64: 1, 256>}]} {
    %c0 = arith.constant 0 : index
    %c0_0 = arith.constant 0 : index
    %0 = vector.load %arg2[%c0, %c0_0] : memref<64x3xf32, #tpu.memory_space<vmem>>, vector<64x3xf32>
    %c0_1 = arith.constant 0 : index
    %c0_2 = arith.constant 0 : index
    %1 = vector.load %arg3[%c0_1, %c0_2] : memref<64x1xf32, #tpu.memory_space<vmem>>, vector<64x1xf32>
    %c0_3 = arith.constant 0 : index
    %c0_4 = arith.constant 0 : index
    %2 = vector.load %arg4[%c0_3, %c0_4] : memref<64x64xf32, #tpu.memory_space<vmem>>, vector<64x64xf32>
    %c0_5 = arith.constant 0 : index
    %c0_6 = arith.constant 0 : index
    %3 = vector.load %arg5[%c0_5, %c0_6] : memref<64x1xf32, #tpu.memory_space<vmem>>, vector<64x1xf32>
    %c0_7 = arith.constant 0 : index
    %c0_8 = arith.constant 0 : index
    %4 = vector.load %arg6[%c0_7, %c0_8] : memref<1x64xf32, #tpu.memory_space<vmem>>, vector<1x64xf32>
    %c0_9 = arith.constant 0 : index
    %c0_10 = arith.constant 0 : index
    %5 = vector.load %arg7[%c0_9, %c0_10] : memref<1x1xf32, #tpu.memory_space<vmem>>, vector<1x1xf32>
    %c0_i32 = arith.constant 0 : i32
    %c256_i32 = arith.constant 256 : i32
    %6 = arith.muli %c0_i32, %c256_i32 : i32
    %7 = tpu.assume_multiple %6, 256 : i32
    %c0_11 = arith.constant 0 : index
    %8 = arith.index_cast %7 : i32 to index
    %9 = vector.load %arg1[%c0_11, %8] : memref<3x256xf32, #tpu.memory_space<vmem>>, vector<3x256xf32>
    %10 = vector.extract_strided_slice %0 {offsets = [0, 0], sizes = [64, 1], strides = [1, 1]} : vector<64x3xf32> to vector<64x1xf32>
    %11 = vector.extract_strided_slice %9 {offsets = [0, 0], sizes = [1, 256], strides = [1, 1]} : vector<3x256xf32> to vector<1x256xf32>
    %12 = vector.broadcast %10 : vector<64x1xf32> to vector<64x256xf32>
    %13 = vector.broadcast %11 : vector<1x256xf32> to vector<64x256xf32>
    %14 = arith.mulf %12, %13 : vector<64x256xf32>
    %15 = vector.extract_strided_slice %0 {offsets = [0, 1], sizes = [64, 1], strides = [1, 1]} : vector<64x3xf32> to vector<64x1xf32>
    %16 = vector.extract_strided_slice %9 {offsets = [1, 0], sizes = [1, 256], strides = [1, 1]} : vector<3x256xf32> to vector<1x256xf32>
    %17 = vector.broadcast %15 : vector<64x1xf32> to vector<64x256xf32>
    %18 = vector.broadcast %16 : vector<1x256xf32> to vector<64x256xf32>
    %19 = arith.mulf %17, %18 : vector<64x256xf32>
    %20 = arith.addf %14, %19 : vector<64x256xf32>
    %21 = vector.extract_strided_slice %0 {offsets = [0, 2], sizes = [64, 1], strides = [1, 1]} : vector<64x3xf32> to vector<64x1xf32>
    %22 = vector.extract_strided_slice %9 {offsets = [2, 0], sizes = [1, 256], strides = [1, 1]} : vector<3x256xf32> to vector<1x256xf32>
    %23 = vector.broadcast %21 : vector<64x1xf32> to vector<64x256xf32>
    %24 = vector.broadcast %22 : vector<1x256xf32> to vector<64x256xf32>
    %25 = arith.mulf %23, %24 : vector<64x256xf32>
    %26 = arith.addf %20, %25 : vector<64x256xf32>
    %27 = vector.broadcast %1 : vector<64x1xf32> to vector<64x256xf32>
    %28 = arith.addf %26, %27 : vector<64x256xf32>
    %29 = math.tanh %28 : vector<64x256xf32>
    %cst = arith.constant dense<0.000000e+00> : vector<64x256xf32>
    %30 = tpu.matmul %2, %29, %cst {dimension_numbers = #tpu.dot_dimension_numbers<[1], [0], [0], [1], [0, 0, 1, 1], [], []>} : vector<64x64xf32>, vector<64x256xf32>, vector<64x256xf32> -> vector<64x256xf32>
    %31 = vector.broadcast %3 : vector<64x1xf32> to vector<64x256xf32>
    %32 = arith.addf %30, %31 : vector<64x256xf32>
    %33 = math.tanh %32 : vector<64x256xf32>
    %cst_12 = arith.constant dense<0.000000e+00> : vector<1x256xf32>
    %34 = tpu.matmul %4, %33, %cst_12 {dimension_numbers = #tpu.dot_dimension_numbers<[1], [0], [0], [1], [0, 0, 1, 1], [], []>} : vector<1x64xf32>, vector<64x256xf32>, vector<1x256xf32> -> vector<1x256xf32>
    %35 = vector.broadcast %5 : vector<1x1xf32> to vector<1x256xf32>
    %36 = arith.addf %34, %35 : vector<1x256xf32>
    %c0_13 = arith.constant 0 : index
    %37 = arith.index_cast %7 : i32 to index
    %38 = vector.load %arg8[%c0_13, %37] : memref<1x256xf32, #tpu.memory_space<vmem>>, vector<1x256xf32>
    tpu.vector_store %arg8[%c0_13, %37], %36 {strides = array<i32>} : memref<1x256xf32, #tpu.memory_space<vmem>>, vector<1x256xf32>,
    %c1_i32 = arith.constant 1 : i32
    return
  }
  func.func @transform_0(%arg0: i32) -> (i32, i32) {
    %c0_i32 = arith.constant 0 : i32
    %c0_i32_0 = arith.constant 0 : i32
    return %c0_i32, %arg0 : i32, i32
  }
  func.func @transform_1(%arg0: i32) -> (i32, i32) {
    %c0_i32 = arith.constant 0 : i32
    %c0_i32_0 = arith.constant 0 : i32
    %c0_i32_1 = arith.constant 0 : i32
    return %c0_i32, %c0_i32_0 : i32, i32
  }
  func.func @transform_2(%arg0: i32) -> (i32, i32) {
    %c0_i32 = arith.constant 0 : i32
    %c0_i32_0 = arith.constant 0 : i32
    %c0_i32_1 = arith.constant 0 : i32
    return %c0_i32, %c0_i32_0 : i32, i32
  }
  func.func @transform_3(%arg0: i32) -> (i32, i32) {
    %c0_i32 = arith.constant 0 : i32
    %c0_i32_0 = arith.constant 0 : i32
    %c0_i32_1 = arith.constant 0 : i32
    return %c0_i32, %c0_i32_0 : i32, i32
  }
  func.func @transform_4(%arg0: i32) -> (i32, i32) {
    %c0_i32 = arith.constant 0 : i32
    %c0_i32_0 = arith.constant 0 : i32
    %c0_i32_1 = arith.constant 0 : i32
    return %c0_i32, %c0_i32_0 : i32, i32
  }
  func.func @transform_5(%arg0: i32) -> (i32, i32) {
    %c0_i32 = arith.constant 0 : i32
    %c0_i32_0 = arith.constant 0 : i32
    %c0_i32_1 = arith.constant 0 : i32
    return %c0_i32, %c0_i32_0 : i32, i32
  }
  func.func @transform_6(%arg0: i32) -> (i32, i32) {
    %c0_i32 = arith.constant 0 : i32
    %c0_i32_0 = arith.constant 0 : i32
    %c0_i32_1 = arith.constant 0 : i32
    return %c0_i32, %c0_i32_0 : i32, i32
  }
  func.func @transform_7(%arg0: i32) -> (i32, i32) {
    %c0_i32 = arith.constant 0 : i32
    %c0_i32_0 = arith.constant 0 : i32
    return %c0_i32, %arg0 : i32, i32
  }
}

</mosaic_0001>

<bundles_post_ra>
// kernel: pinn_forward.1
= control target key start
LH: loop header
LB: loop body
LE: loop exit
PB: predicated region body
PF: predicated region fallthrough
CT: control target
= control target key end

     0   :  { %s1656_s0 = inlined_call_operand.vmem [shape: f32[3,300], index: 0, kind: input, shape index: {}]   ;;  %s1657_s1 = inlined_call_operand.vmem [shape: f32[64,3], index: 1, kind: input, shape index: {}]   ;;  %s1658_s2 = inlined_call_operand.vmem [shape: f32[64,1], index: 2, kind: input, shape index: {}]   ;;  %s1659_s3 = inlined_call_operand.vmem [shape: f32[64,64], index: 3, kind: input, shape index: {}]   ;;  %s1660_s4 = inlined_call_operand.vmem [shape: f32[64,1], index: 4, kind: input, shape index: {}]   ;;  %s1661_s5 = inlined_call_operand.vmem [shape: f32[1,64], index: 5, kind: input, shape index: {}]   ;;  %s1662_s6 = inlined_call_operand.<no memory space> [shape: f32[1,1], index: 6, kind: input, shape index: {}]   ;;  %s1663_s7 = inlined_call_operand.hbm [shape: f32[1,300], index: 7, kind: output, shape index: {}]  }
   0x1   :  { %v12_v0 = vstv %s1662_s6 }
   0x2   :  { %13 = vst [vmem:[#allocation2] sm:$0x1] %v12_v0 }
   0x3   :  { %14 = vsyncpa [#allocation4], 0 }
   0x4   :  { %16 = vsyncpa [#allocation4 + $0x1], 0  ;;  %s1322_s26 = smov 0   ;;  %s1324_s27 = smov 0  }
   0x5   :  { %s1326_s28 = smov 0   ;;  %s1328_s29 = smov 0  }
   0x6 LB: > { %s1343_s6 = sadd.s32 4294967295, %s1271_s29   ;;  %s1031_s30 = sadd.s32 4294967294, %s1271_s29   ;;  %s1271_s29 = sphi %s1328_s29, %s1669_s29   ;;  %s1267_s28 = sphi %s1326_s28, %s1668_s28   ;;  %s1263_s27 = sphi %s1324_s27, %s1667_s27   ;;  %s1259_s26 = sphi %s1322_s26, %s1666_s26  }
   0x7   : > { %s1347_s8 = sadd.s32 1, %s1271_s29   ;;  %s181_s9 = sadd.s32 1, %s1267_s28 }
   0x8   : > { %s178_s10 = ssub.s32 %s1271_s29, %s1347_s8  ;;  %p191_p0 = scmp.ne.s32.totalorder %s1267_s28, %s1263_s27 }
   0x9   : > { %p179_p1 = scmp.eq.s32.totalorder %s178_s10, 0  ;;  %p192_p2 = scmp.eq.s32.totalorder %s1343_s6, 1 }
   0xa   : > { %p197_p3 = scmp.ne.s32.totalorder %s1263_s27, %s1259_s26  ;;  %p198_p4 = scmp.eq.s32.totalorder %s1031_s30, 1 }
   0xb   : > { %s1358_s11 = scalar_select %p179_p1, %s1267_s28, %s181_s9  }
   0xc   : > { %p1360_p5 = por %p192_p2, %p191_p0  ;;  %p1364_p6 = por %p198_p4, %p197_p3 }
   0xd   : > { %p1034_p7 = scmp.ge.s32.totalorder %s1271_s29, 1  ;;  %p251_p8 = scmp.lt.s32.totalorder %s1271_s29, 3 }
   0xf   : > { %p252_p9 = pnand %p1034_p7, %p251_p8 }
  0x10   : > { %v306_v1 = vld [vmem:[%s1657_s1] sm:$0xff] (!%p252_p9)  ;;  %v1273_v2 = vmov (!%p252_p9), 2   ;;  %v1274_v3 = vmov (!%p252_p9), 1   ;;  %v308_v4 = vld [vmem:[%s1657_s1 + $0x10] sm:$0xff] (!%p252_p9)  ;;  %v307_v5 = vld [vmem:[%s1657_s1 + $0x8] sm:$0xff] (!%p252_p9)  ;;  %v1275_v8 = vmov (!%p252_p9), 0   ;;  %v382_v34 = vlaneseq (!%p252_p9) }
  0x11   : > { %255 = sbr.rel (%p252_p9) target bundleno = 762 (0x2fa), region = 48  ;;  %1131 = vset.pattern.permute.xlu0 (!%p252_p9), %v1273_v2  ;;  %1130 = vset.pattern.permute.xlu1 (!%p252_p9), %v1274_v3  ;;  %v311_v6 = vld [vmem:[%s1657_s1 + $0x28] sm:$0xff] (!%p252_p9)  ;;  %v310_v7 = vld [vmem:[%s1657_s1 + $0x20] sm:$0xff] (!%p252_p9)  ;;  %v313_v9 = vld [vmem:[%s1657_s1 + $0x38] sm:$0xff] (!%p252_p9)  ;;  %v1276_v29 = vmov (!%p252_p9), 0.0   ;;  %s1450_s17 = sshll.u32 (!%p252_p9), %s1343_s6, 1 }
  0x12   : > { %499 = vperm.xlu0 (!%p252_p9), %1131, %v306_v1   ;;  %417 = vperm.xlu1 (!%p252_p9), %1130, %v306_v1   ;;  %v309_v10 = vld [vmem:[%s1657_s1 + $0x18] sm:$0xff] (!%p252_p9)  ;;  %v314_v11 = vld [vmem:[%s1658_s2] sm:$0xff] (!%p252_p9)  ;;  %v315_v12 = vld [vmem:[%s1658_s2 + $0x8] sm:$0xff] (!%p252_p9)  ;;  %p292_p10 = scmp.lt.s32.totalorder (!%p252_p9), %s1450_s17, 2  ;;  %v1459_v37 = vshrl.u32 (!%p252_p9), %v382_v34, 7  ;;  %vm692_vm0 = vcmask (!%p252_p9), 523264  }
  0x13   : > { %v312_v13 = vld [vmem:[%s1657_s1 + $0x30] sm:$0xff] (!%p252_p9)  ;;  %v318_v14 = vld [vmem:[%s1658_s2 + $0x20] sm:$0xff] (!%p252_p9)  ;;  %v321_v15 = vld [vmem:[%s1658_s2 + $0x38] sm:$0xff] (!%p252_p9)  ;;  %781 = vmatprep.mubr.f32.mxu0 (!%p252_p9), %v1276_v29  ;;  %922 = vmatprep.mubr.f32.mxu1 (!%p252_p9), %v1276_v29  ;;  %s284_s9 = sand.u32 (!%p252_p9), 1, %s1263_s27   ;;  %vm949_vm1 = vcmp.lt.s32.totalorder (!%p252_p9), %v382_v34, 256 }
  0x14   : > { %v331_v16 = vld [vmem:[%s1660_s4 + $0x8] sm:$0xff] (!%p252_p9)  ;;  %v333_v17 = vld [vmem:[%s1660_s4 + $0x18] sm:$0xff] (!%p252_p9)  ;;  %v316_v18 = vld [vmem:[%s1658_s2 + $0x10] sm:$0xff] (!%p252_p9)  ;;  %v450_v39 = vsub.s32 (!%p252_p9), 1, %v1459_v37  ;;  %v454_v40 = vsub.s32 (!%p252_p9), 5, %v1459_v37  ;;  %v1469_v41 = vsub.s32 (!%p252_p9), 0, %v1459_v37 }
  0x15   : > { %v335_v19 = vld [vmem:[%s1660_s4 + $0x28] sm:$0xff] (!%p252_p9)  ;;  %v317_v20 = vld [vmem:[%s1658_s2 + $0x18] sm:$0xff] (!%p252_p9)  ;;  %v320_v23 = vld [vmem:[%s1658_s2 + $0x30] sm:$0xff] (!%p252_p9)  ;;  %v388_v42 = vsub.s32 (!%p252_p9), 4, %v1459_v37  ;;  %v532_v45 = vsub.s32 (!%p252_p9), 2, %v1459_v37  ;;  %v536_v46 = vsub.s32 (!%p252_p9), 6, %v1459_v37 }
  0x16   : > { %507 = vperm.xlu0 (!%p252_p9), %1131, %v308_v4   ;;  %421 = vperm.xlu1 (!%p252_p9), %1130, %v307_v5   ;;  %v337_v21 = vld [vmem:[%s1660_s4 + $0x38] sm:$0xff] (!%p252_p9)  ;;  %v319_v22 = vld [vmem:[%s1658_s2 + $0x28] sm:$0xff] (!%p252_p9)  ;;  %v330_v24 = vld [vmem:[%s1660_s4] sm:$0xff] (!%p252_p9)  ;;  %s1035_s10 = sshll.u32 (!%p252_p9), %s284_s9, 1  ;;  %s1602_s15 = scalar_lea.sflag (!%p252_p9), [#allocation4], %s284_s9 }
  0x17   : > { %v332_v25 = vld [vmem:[%s1660_s4 + $0x10] sm:$0xff] (!%p252_p9)  ;;  %v334_v26 = vld [vmem:[%s1660_s4 + $0x20] sm:$0xff] (!%p252_p9)  ;;  %s286_s14 = scalar_lea.vmem (!%p252_p9), [#allocation3], %s1035_s10 }
  0x18   : > { %v336_v27 = vld [vmem:[%s1660_s4 + $0x30] sm:$0xff]  ;;  %v339_v28 = vld [vmem:[#allocation2] sm:$0x1]  ;;  %s293_s18 = scalar_select %p292_p10, %s1450_s17, 2 }
  0x19   : > { %s961_s16 = ssub.s32 (%p1360_p5), 3, %s1450_s17 }
  0x1a   : > { %519 = vperm.xlu0 %1131, %v311_v6   ;;  %1132 = vset.pattern.permute.xlu1 %v1273_v2  ;;  %s1037_s19 = sshll.u32 %s293_s18, 2  ;;  %p962_p11 = scmp.lt.s32.totalorder (%p1360_p5), %s961_s16, 2 }
  0x1b   : > { %503 = vperm.xlu1 %1132, %v307_v5   ;;  %s295_s22 = scalar_lea.vmem %s1656_s0, %s1037_s19 }
  0x1c   : > { %v340_v44 = vld [vmem:[%s295_s22] sm:$0x77] }
  0x1d   : > { %v451_v48 = vrot.slane %v340_v44, %v450_v39  ;;  %v455_v49 = vrot.slane %v340_v44, %v454_v40  ;;  %v385_v50 = vrot.slane %v340_v44, %v1469_v41  ;;  %v389_v51 = vrot.slane %v340_v44, %v388_v42 }
  0x1e   : > { %1139 = vset.pattern.permute.xlu0 %v1274_v3  ;;  %v533_v53 = vrot.slane %v340_v44, %v532_v45  ;;  %v537_v54 = vrot.slane %v340_v44, %v536_v46 }
  0x1f   : > { %433 = vperm.xlu0 %1139, %v310_v7   ;;  %1133 = vset.pattern.permute.xlu1 %v1275_v8  ;;  %v1479_v55 = vrot.slane %v451_v48, %v450_v39  ;;  %v1481_v56 = vrot.slane %v455_v49, %v450_v39  ;;  %v1484_v57 = vrot.slane %v385_v50, %v1469_v41 }
  0x20   : > { %353 = vperm.xlu1 %1133, %v308_v4   ;;  %v1487_v58 = vrot.slane %v389_v51, %v1469_v41 }
  0x23   : > { %445 = vperm.xlu0 %1139, %v313_v9  }
  0x24   : > { %1134 = vset.pattern.permute.xlu1 %v1274_v3 }
  0x25   : > { %425 = vperm.xlu1 %1134, %v308_v4  }
  0x27   : > { %1142 = vset.pattern.permute.xlu0 %v1275_v8 }
  0x28   : > { %343 = vperm.xlu0 %1142, %v306_v1   ;;  %v1493_v1 = vrot.slane %v533_v53, %v532_v45 }
  0x29   : > { %429 = vperm.xlu1 %1134, %v309_v10  }
  0x2c   : > { %348 = vperm.xlu0 %1142, %v307_v5  }
  0x2d   : > { %1135 = vset.pattern.permute.xlu1 %v1273_v2 }
  0x2e   : > { %511 = vperm.xlu1 %1135, %v309_v10  }
  0x30   : > { %358 = vperm.xlu0 %1142, %v309_v10  }
  0x32   : > { %1136 = vset.pattern.permute.xlu1 %v1275_v8 }
  0x33   : > { %582 = vperm.xlu1 %1136, %v314_v11  }
  0x34   : > { %587 = vperm.xlu0 %1142, %v315_v12  }
  0x37   : > { %363 = vperm.xlu1 %1136, %v310_v7  }
  0x38   : > { %373 = vperm.xlu0 %1142, %v312_v13  }
  0x3b   : > { %368 = vperm.xlu1 %1136, %v311_v6  }
  0x3c   : > { %602 = vperm.xlu0 %1142, %v318_v14  }
  0x3f   : > { %1137 = vset.pattern.permute.xlu1 %v1274_v3 }
  0x40   : > { %437 = vperm.xlu1 %1137, %v311_v6   ;;  %617 = vperm.xlu0 %1142, %v321_v15  }
  0x44   : > { %1138 = vset.pattern.permute.xlu1 %v1273_v2  ;;  %659 = vperm.xlu0 %1142, %v331_v16  }
  0x45   : > { %515 = vperm.xlu1 %1138, %v310_v7  }
  0x48   : > { %669 = vperm.xlu0 %1142, %v333_v17  }
  0x49   : > { %1140 = vset.pattern.permute.xlu1 %v1275_v8 }
  0x4a   : > { %592 = vperm.xlu1 %1140, %v316_v18  }
  0x4c   : > { %679 = vperm.xlu0 %1142, %v335_v19  }
  0x4e   : > { %597 = vperm.xlu1 %1140, %v317_v20  }
  0x50   : > { %689 = vperm.xlu0 %1142, %v337_v21  }
  0x52   : > { %378 = vperm.xlu1 %1140, %v313_v9  }
  0x56   : > { %1141 = vset.pattern.permute.xlu1 %v1274_v3 }
  0x57   : > { %441 = vperm.xlu1 %1141, %v312_v13  }
  0x5b   : > { %1143 = vset.pattern.permute.xlu1 %v1273_v2  ;;  %v1495_v2 = vrot.slane %v537_v54, %v532_v45 }
  0x5c   : > { %523 = vperm.xlu1 %1143, %v312_v13  }
  0x60   : > { %527 = vperm.xlu1 %1143, %v313_v9  }
  0x64   : > { %1144 = vset.pattern.permute.xlu1 %v1275_v8 }
  0x65   : > { %607 = vperm.xlu1 %1144, %v319_v22  }
  0x69   : > { %612 = vperm.xlu1 %1144, %v320_v23  }
  0x6d   : > { %654 = vperm.xlu1 %1144, %v330_v24  }
  0x71   : > { %664 = vperm.xlu1 %1144, %v332_v25  }
  0x75   : > { %674 = vperm.xlu1 %1144, %v334_v26  }
  0x79   : > { %684 = vperm.xlu1 %1144, %v336_v27  }
  0x7d   : > { %848 = vperm.xlu1 %1144, %v339_v28  }
  0x91   : > { %v418_v30 = vpop.permute.xlu1 %417  ;;  %v500_v31 = vpop.permute.xlu0 %499 }
  0x92   : > { %v466_v63 = vmul.f32 %v1479_v55, %v418_v30  ;;  %v467_v0 = vmul.f32 %v1481_v56, %v418_v30  ;;  %v548_v8 = vmul.f32 %v1493_v1, %v500_v31  ;;  %v549_v9 = vmul.f32 %v1495_v2, %v500_v31 }
  0x95   : > { %v422_v32 = vpop.permute.xlu1 %421  ;;  %v1453_v33 = vpop.permute.xlu0 %507 }
  0x96   : > { %v468_v4 = vmul.f32 %v1479_v55, %v422_v32  ;;  %v469_v5 = vmul.f32 %v1481_v56, %v422_v32  ;;  %v552_v50 = vmul.f32 %v1493_v1, %v1453_v33 }
  0x99   : > { %v1456_v35 = vpop.permute.xlu0 %519 }
  0x9a   : > { %v504_v36 = vpop.permute.xlu1 %503 }
  0x9b   : > { %v550_v16 = vmul.f32 %v1493_v1, %v504_v36  ;;  %v551_v17 = vmul.f32 %v1495_v2, %v504_v36 }
  0x9e   : > { %v1464_v38 = vpop.permute.xlu0 %433 }
  0x9f   : > { %v1472_v43 = vpop.permute.xlu1 %353 }
  0xa0   : > { %v404_v45 = vmul.f32 %v1484_v57, %v1472_v43  ;;  %v405_v48 = vmul.f32 %v1487_v58, %v1472_v43 }
  0xa2   : > { %v1476_v47 = vpop.permute.xlu0 %445 }
  0xa4   : > { %v426_v52 = vpop.permute.xlu1 %425 }
  0xa5   : > { %v470_v39 = vmul.f32 %v1479_v55, %v426_v52  ;;  %v471_v42 = vmul.f32 %v1481_v56, %v426_v52  ;;  %v553_v52 = vmul.f32 %v1495_v2, %v1453_v33 }
  0xa7   : > { %v344_v59 = vpop.permute.xlu0 %343  ;;  %v486_v51 = vadd.f32 %v470_v39, %v404_v45 }
  0xa8   : > { %v430_v60 = vpop.permute.xlu1 %429  ;;  %v400_v61 = vmul.f32 %v1484_v57, %v344_v59  ;;  %v401_v62 = vmul.f32 %v1487_v58, %v344_v59 }
  0xaa   : > { %v482_v10 = vadd.f32 %v466_v63, %v400_v61  ;;  %v483_v11 = vadd.f32 %v467_v0, %v401_v62  ;;  %v487_v61 = vadd.f32 %v471_v42, %v405_v48  ;;  %v472_v62 = vmul.f32 %v1479_v55, %v430_v60 }
  0xab   : > { %v349_v3 = vpop.permute.xlu0 %348  ;;  %v473_v63 = vmul.f32 %v1481_v56, %v430_v60 }
  0xac   : > { %v402_v6 = vmul.f32 %v1484_v57, %v349_v3  ;;  %v403_v7 = vmul.f32 %v1487_v58, %v349_v3  ;;  %v564_v18 = vadd.f32 %v548_v8, %v482_v10  ;;  %v565_v19 = vadd.f32 %v549_v9, %v483_v11 }
  0xad   : > { %v512_v12 = vpop.permute.xlu1 %511  ;;  %v568_v3 = vadd.f32 %v552_v50, %v486_v51  ;;  %v558_v51 = vmul.f32 %v1493_v1, %v1456_v35 }
  0xae   : > { %v484_v13 = vadd.f32 %v468_v4, %v402_v6  ;;  %v485_v14 = vadd.f32 %v469_v5, %v403_v7  ;;  %v569_v5 = vadd.f32 %v553_v52, %v487_v61  ;;  %v554_v6 = vmul.f32 %v1493_v1, %v512_v12 }
  0xaf   : > { %v359_v15 = vpop.permute.xlu0 %358  ;;  %v555_v7 = vmul.f32 %v1495_v2, %v512_v12 }
  0xb0   : > { %v566_v21 = vadd.f32 %v550_v16, %v484_v13  ;;  %v567_v22 = vadd.f32 %v551_v17, %v485_v14  ;;  %v406_v53 = vmul.f32 %v1484_v57, %v359_v15  ;;  %v407_v54 = vmul.f32 %v1487_v58, %v359_v15 }
  0xb1   : > { %v474_v15 = vmul.f32 %v1479_v55, %v1464_v38 }
  0xb2   : > { %v583_v20 = vpop.permute.xlu1 %582  ;;  %v488_v43 = vadd.f32 %v472_v62, %v406_v53  ;;  %v489_v0 = vadd.f32 %v473_v63, %v407_v54 }
  0xb3   : > { %v620_v23 = vadd.f32 %v583_v20, %v564_v18  ;;  %v621_v24 = vadd.f32 %v583_v20, %v565_v19  ;;  %v588_v25 = vpop.permute.xlu0 %587  ;;  %v475_v20 = vmul.f32 %v1481_v56, %v1464_v38 }
  0xb4   : > { %v622_v26 = vadd.f32 %v588_v25, %v566_v21  ;;  %v623_v27 = vadd.f32 %v588_v25, %v567_v22  ;;  %v570_v10 = vadd.f32 %v554_v6, %v488_v43  ;;  %v571_v33 = vadd.f32 %v555_v7, %v489_v0 }
  0xb5   : > { %1145 = vtanh.f32 %v620_v23  ;;  %v559_v43 = vmul.f32 %v1495_v2, %v1456_v35 }
  0xb6   : > { %1147 = vtanh.f32 %v621_v24  ;;  %v364_v28 = vpop.permute.xlu1 %363 }
  0xb7   : > { %1149 = vtanh.f32 %v622_v26  ;;  %v408_v16 = vmul.f32 %v1484_v57, %v364_v28  ;;  %v374_v18 = vpop.permute.xlu0 %373  ;;  %v409_v21 = vmul.f32 %v1487_v58, %v364_v28 }
  0xb8   : > { %1151 = vtanh.f32 %v623_v27 }
  0xb9   : > { %v490_v23 = vadd.f32 %v474_v15, %v408_v16  ;;  %v491_v42 = vadd.f32 %v475_v20, %v409_v21 }
  0xba   : > { %v1505_v30 = vpop.permute.xlu1 %368 }
  0xbb   : > { %v410_v28 = vmul.f32 %v1484_v57, %v1505_v30  ;;  %v603_v48 = vpop.permute.xlu0 %602 }
  0xbf   : > { %v1146_v31 = vpop.eup %1145  ;;  %v438_v32 = vpop.permute.xlu1 %437 }
  0xc0   : > { %v1148_v36 = vpop.eup %1147  ;;  %v476_v27 = vmul.f32 %v1479_v55, %v438_v32 }
  0xc1   : > { %v1150_v40 = vpop.eup %1149 }
  0xc2   : > { %v1152_v44 = vpop.eup %1151  ;;  %v1057_v46 = vpack.c.bf16 %v1150_v40, %v1146_v31  ;;  %v477_v31 = vmul.f32 %v1481_v56, %v438_v32  ;;  %v481_v32 = vmul.f32 %v1481_v56, %v1476_v47  ;;  %v492_v53 = vadd.f32 %v476_v27, %v410_v28 }
  0xc3   : > { %v1055_v49 = vpack.c.bf16 %v1152_v44, %v1148_v36 }
  0xc4   : > { %v516_v59 = vpop.permute.xlu1 %515 }
  0xc5   : > { %1056 = vmatprep.subr.bf16.mxu0 %v1055_v49  ;;  %v556_v12 = vmul.f32 %v1493_v1, %v516_v59  ;;  %v557_v25 = vmul.f32 %v1495_v2, %v516_v59  ;;  %v480_v49 = vmul.f32 %v1479_v55, %v1476_v47  ;;  %v412_v47 = vmul.f32 %v1484_v57, %v374_v18 }
  0xc6   : > { %1058 = vmatpush1.bf16.msra.mxu0 %v1057_v46  ;;  %v411_v46 = vmul.f32 %v1487_v58, %v1505_v30 }
  0xc7   : > { %v572_v36 = vadd.f32 %v556_v12, %v490_v23  ;;  %v573_v50 = vadd.f32 %v557_v25, %v491_v42  ;;  %v326_v42 = vld [vmem:[%s1659_s3 + $0x20] sm:$0xff] }
  0xc8   : > { %v493_v54 = vadd.f32 %v477_v31, %v411_v46  ;;  %v322_v31 = vld [vmem:[%s1659_s3] sm:$0xff] }
  0xc9   : > { %v593_v4 = vpop.permute.xlu1 %592  ;;  %v628_v59 = vadd.f32 %v603_v48, %v572_v36  ;;  %v323_v36 = vld [vmem:[%s1659_s3 + $0x8] sm:$0xff] }
  0xca   : > { %v624_v8 = vadd.f32 %v593_v4, %v568_v3  ;;  %v625_v9 = vadd.f32 %v593_v4, %v569_v5  ;;  %v413_v4 = vmul.f32 %v1487_v58, %v374_v18  ;;  %v629_v5 = vadd.f32 %v603_v48, %v573_v50 }
  0xcc   : > { %1153 = vtanh.f32 %v624_v8  ;;  %v618_v8 = vpop.permute.xlu0 %617 }
  0xcd   : > { %v598_v11 = vpop.permute.xlu1 %597  ;;  %1155 = vtanh.f32 %v625_v9 }
  0xce   : > { %v626_v13 = vadd.f32 %v598_v11, %v570_v10  ;;  %v627_v14 = vadd.f32 %v598_v11, %v571_v33  ;;  %v574_v33 = vadd.f32 %v558_v51, %v492_v53  ;;  %v575_v11 = vadd.f32 %v559_v43, %v493_v54 }
  0xd0   : > { %1157 = vtanh.f32 %v626_v13  ;;  %v660_v50 = vpop.permute.xlu0 %659 }
  0xd1   : > { %1159 = vtanh.f32 %v627_v14  ;;  %v379_v60 = vpop.permute.xlu1 %378 }
  0xd2   : > { %v414_v44 = vmul.f32 %v1484_v57, %v379_v60  ;;  %v415_v38 = vmul.f32 %v1487_v58, %v379_v60  ;;  %1161 = vtanh.f32 %v628_v59 }
  0xd3   : > { %1163 = vtanh.f32 %v629_v5 }
  0xd4   : > { %v496_v61 = vadd.f32 %v480_v49, %v414_v44  ;;  %v497_v62 = vadd.f32 %v481_v32, %v415_v38  ;;  %v327_v44 = vld [vmem:[%s1659_s3 + $0x28] sm:$0xff]  ;;  %v328_v38 = vld [vmem:[%s1659_s3 + $0x30] sm:$0xff] }
  0xd6   : > { %v442_v17 = vpop.permute.xlu1 %441  ;;  %v1154_v19 = vpop.eup %1153 }
  0xd7   : > { %v1156_v22 = vpop.eup %1155  ;;  %v478_v0 = vmul.f32 %v1479_v55, %v442_v17  ;;  %v479_v3 = vmul.f32 %v1481_v56, %v442_v17 }
  0xd9   : > { %v494_v57 = vadd.f32 %v478_v0, %v412_v47  ;;  %v495_v14 = vadd.f32 %v479_v3, %v413_v4 }
  0xda   : > { %v1158_v24 = vpop.eup %1157 }
  0xdb   : > { %v1160_v26 = vpop.eup %1159  ;;  %v524_v39 = vpop.permute.xlu1 %523  ;;  %v1061_v40 = vpack.c.bf16 %v1158_v24, %v1154_v19 }
  0xdc   : > { %v1059_v45 = vpack.c.bf16 %v1160_v26, %v1156_v22  ;;  %v560_v9 = vmul.f32 %v1493_v1, %v524_v39  ;;  %v561_v10 = vmul.f32 %v1495_v2, %v524_v39  ;;  %v324_v39 = vld [vmem:[%s1659_s3 + $0x10] sm:$0xff] }
  0xde   : > { %1060 = vmatprep.subr.bf16.mxu0 %v1059_v45  ;;  %v576_v58 = vadd.f32 %v560_v9, %v494_v57  ;;  %v577_v15 = vadd.f32 %v561_v10, %v495_v14  ;;  %v329_v45 = vld [vmem:[%s1659_s3 + $0x38] sm:$0xff] }
  0xdf   : > { %1062 = vmatpush1.bf16.msra.mxu0 %v1061_v40  ;;  %v528_v52 = vpop.permute.xlu1 %527  ;;  %v325_v40 = vld [vmem:[%s1659_s3 + $0x18] sm:$0xff] }
  0xe0   : > { %v562_v30 = vmul.f32 %v1493_v1, %v528_v52  ;;  %v563_v63 = vmul.f32 %v1495_v2, %v528_v52  ;;  %v1162_v2 = vpop.eup %1161 }
  0xe1   : > { %v1164_v18 = vpop.eup %1163 }
  0xe2   : > { %v578_v6 = vadd.f32 %v562_v30, %v496_v61  ;;  %v579_v7 = vadd.f32 %v563_v63, %v497_v62  ;;  %v670_v63 = vpop.permute.xlu0 %669 }
  0xe4   : > { %v634_v35 = vadd.f32 %v618_v8, %v578_v6  ;;  %v608_v13 = vpop.permute.xlu1 %607  ;;  %v635_v56 = vadd.f32 %v618_v8, %v579_v7 }
  0xe5   : > { %v630_v55 = vadd.f32 %v608_v13, %v574_v33  ;;  %v631_v60 = vadd.f32 %v608_v13, %v575_v11 }
  0xe6   : > { %1165 = vtanh.f32 %v634_v35  ;;  %v680_v57 = vpop.permute.xlu0 %679 }
  0xe7   : > { %1167 = vtanh.f32 %v630_v55 }
  0xe8   : > { %v613_v16 = vpop.permute.xlu1 %612  ;;  %1169 = vtanh.f32 %v631_v60 }
  0xe9   : > { %v632_v1 = vadd.f32 %v613_v16, %v576_v58  ;;  %v633_v17 = vadd.f32 %v613_v16, %v577_v15  ;;  %1171 = vtanh.f32 %v635_v56 }
  0xeb   : > { %1173 = vtanh.f32 %v632_v1 }
  0xec   : > { %1175 = vtanh.f32 %v633_v17  ;;  %v655_v28 = vpop.permute.xlu1 %654 }
  0xf0   : > { %v1166_v12 = vpop.eup %1165 }
  0xf1   : > { %v1168_v19 = vpop.eup %1167 }
  0xf2   : > { %v1170_v20 = vpop.eup %1169  ;;  %v1065_v21 = vpack.c.bf16 %v1168_v19, %v1162_v2 }
  0xf3   : > { %v1172_v22 = vpop.eup %1171  ;;  %v1063_v23 = vpack.c.bf16 %v1170_v20, %v1164_v18 }
  0xf5   : > { %v1174_v24 = vpop.eup %1173  ;;  %1064 = vmatprep.subr.bf16.mxu0 %v1063_v23 }
  0xf6   : > { %v1176_v25 = vpop.eup %1175  ;;  %1066 = vmatpush1.bf16.msra.mxu0 %v1065_v21  ;;  %v1069_v27 = vpack.c.bf16 %v1166_v12, %v1174_v24 }
  0xf7   : > { %v1067_v26 = vpack.c.bf16 %v1172_v22, %v1176_v25  ;;  %v690_v22 = vpop.permute.xlu0 %689 }
  0xf9   : > { %1068 = vmatprep.subr.bf16.mxu0 %v1067_v26 }
  0xfa   : > { %1070 = vmatpush1.bf16.msra.mxu0 %v1069_v27 }
  0xfd   : > { %1038 = vmatmul.mubr.msk.f32.vlgmr.msra.gmra.mrb[0].mxu0 %vm692_vm0, %v322_v31 }
  0xfe   : > { %787 = vmatprep.mubr.f32.mxu0 %v1276_v29 }
 0x101   : > { %1039 = vmatmul.mubr.msk.f32.gmra.mrb[2].mxu0 %vm692_vm0, %v323_v36 }
 0x102   : > { %793 = vmatprep.mubr.f32.mxu0 %v1276_v29 }
 0x105   : > { %1040 = vmatmul.mubr.msk.f32.gmra.mrb[4].mxu0 %vm692_vm0, %v324_v39 }
 0x106   : > { %799 = vmatprep.mubr.f32.mxu0 %v1276_v29 }
 0x109   : > { %1041 = vmatmul.mubr.msk.f32.gmra.mrb[6].mxu0 %vm692_vm0, %v325_v40 }
 0x10a   : > { %805 = vmatprep.mubr.f32.mxu0 %v1276_v29 }
 0x10d   : > { %1042 = vmatmul.mubr.msk.f32.gmra.mrb[8].mxu0 %vm692_vm0, %v326_v42 }
 0x10e   : > { %811 = vmatprep.mubr.f32.mxu0 %v1276_v29 }
 0x111   : > { %1043 = vmatmul.mubr.msk.f32.gmra.mrb[10].mxu0 %vm692_vm0, %v327_v44 }
 0x112   : > { %817 = vmatprep.mubr.f32.mxu0 %v1276_v29 }
 0x115   : > { %1044 = vmatmul.mubr.msk.f32.gmra.mrb[12].mxu0 %vm692_vm0, %v328_v38 }
 0x116   : > { %823 = vmatprep.mubr.f32.mxu0 %v1276_v29  ;;  %v665_v29 = vpop.permute.xlu1 %664 }
 0x119   : > { %1045 = vmatmul.mubr.msk.f32.gmra.mrb[14].mxu0 %vm692_vm0, %v329_v45 }
 0x11a   : > { %v675_v6 = vpop.permute.xlu1 %674 }
 0x11e   : > { %v685_v16 = vpop.permute.xlu1 %684 }
 0x1d0   : > { %v783_v46 = vpop.f32.mrb[0].mxu0 }
 0x1d1   : > { %v784_v48 = vadd.f32 %v783_v46, %v655_v28  ;;  %v785_v49 = vpop.f32.mrb[1].mxu0 }
 0x1d2   : > { %v786_v32 = vadd.f32 %v785_v49, %v655_v28  ;;  %v338_v49 = vld [vmem:[%s1661_s5] sm:$0x1] }
 0x1d3   : > { %1177 = vtanh.f32 %v784_v48 }
 0x1d4   : > { %v789_v51 = vpop.f32.mrb[2].mxu0  ;;  %1179 = vtanh.f32 %v786_v32  ;;  %v1277_v32 = vmov 1966171168  }
 0x1d5   : > { %v790_v53 = vadd.f32 %v789_v51, %v660_v50  ;;  %v791_v54 = vpop.f32.mrb[3].mxu0  ;;  %v849_v51 = vpop.permute.xlu1 %848 }
 0x1d6   : > { %v792_v59 = vadd.f32 %v791_v54, %v660_v50  ;;  %v933_v50 = vunpack.c.l.s4 %v1277_v32  ;;  %v854_v54 = vrot.slane %v849_v51, %v1469_v41 }
 0x1d7   : > { %1181 = vtanh.f32 %v790_v53 }
 0x1d8   : > { %1183 = vtanh.f32 %v792_v59  ;;  %v795_v52 = vpop.f32.mrb[4].mxu0  ;;  %v934_v53 = vunpack.c.0.s8 %v933_v50 }
 0x1d9   : > { %v796_v61 = vadd.f32 %v795_v52, %v665_v29  ;;  %v797_v62 = vpop.f32.mrb[5].mxu0 }
 0x1da   : > { %v798_v30 = vadd.f32 %v797_v62, %v665_v29  ;;  %v937_v62 = vsub.s32 %v934_v53, %v1459_v37 }
 0x1db   : > { %1185 = vtanh.f32 %v796_v61 }
 0x1dc   : > { %v801_v43 = vpop.f32.mrb[6].mxu0  ;;  %1187 = vtanh.f32 %v798_v30 }
 0x1dd   : > { %v802_v47 = vadd.f32 %v801_v43, %v670_v63  ;;  %v803_v0 = vpop.f32.mrb[7].mxu0  ;;  %v1178_v4 = vpop.eup %1177 }
 0x1de   : > { %v804_v3 = vadd.f32 %v803_v0, %v670_v63  ;;  %v1180_v5 = vpop.eup %1179 }
 0x1df   : > { %1189 = vtanh.f32 %v802_v47 }
 0x1e0   : > { %1191 = vtanh.f32 %v804_v3  ;;  %v807_v7 = vpop.f32.mrb[8].mxu0 }
 0x1e1   : > { %v1182_v8 = vpop.eup %1181  ;;  %v808_v9 = vadd.f32 %v807_v7, %v675_v6  ;;  %v809_v10 = vpop.f32.mrb[9].mxu0 }
 0x1e2   : > { %v1184_v33 = vpop.eup %1183  ;;  %v810_v11 = vadd.f32 %v809_v10, %v675_v6  ;;  %v1073_v35 = vpack.c.bf16 %v1182_v8, %v1178_v4 }
 0x1e3   : > { %v1071_v13 = vpack.c.bf16 %v1184_v33, %v1180_v5  ;;  %1193 = vtanh.f32 %v808_v9 }
 0x1e4   : > { %v813_v14 = vpop.f32.mrb[10].mxu0  ;;  %1195 = vtanh.f32 %v810_v11 }
 0x1e5   : > { %v814_v55 = vadd.f32 %v813_v14, %v680_v57  ;;  %v815_v60 = vpop.f32.mrb[11].mxu0  ;;  %1072 = vmatprep.subr.bf16.mxu1 %v1071_v13  ;;  %v1186_v58 = vpop.eup %1185 }
 0x1e6   : > { %v816_v56 = vadd.f32 %v815_v60, %v680_v57  ;;  %1074 = vmatpush1.bf16.msra.mxu1 %v1073_v35  ;;  %v1188_v15 = vpop.eup %1187 }
 0x1e7   : > { %1197 = vtanh.f32 %v814_v55 }
 0x1e8   : > { %1199 = vtanh.f32 %v816_v56  ;;  %v819_v1 = vpop.f32.mrb[12].mxu0 }
 0x1e9   : > { %v1190_v17 = vpop.eup %1189  ;;  %v820_v2 = vadd.f32 %v819_v1, %v685_v16  ;;  %v821_v18 = vpop.f32.mrb[13].mxu0 }
 0x1ea   : > { %v1192_v12 = vpop.eup %1191  ;;  %v822_v19 = vadd.f32 %v821_v18, %v685_v16  ;;  %v1077_v20 = vpack.c.bf16 %v1190_v17, %v1186_v58 }
 0x1eb   : > { %v1075_v21 = vpack.c.bf16 %v1192_v12, %v1188_v15  ;;  %1201 = vtanh.f32 %v820_v2 }
 0x1ec   : > { %v825_v23 = vpop.f32.mrb[14].mxu0  ;;  %1203 = vtanh.f32 %v822_v19 }
 0x1ed   : > { %v826_v24 = vadd.f32 %v825_v23, %v690_v22  ;;  %v827_v25 = vpop.f32.mrb[15].mxu0  ;;  %1076 = vmatprep.subr.bf16.mxu1 %v1075_v21  ;;  %v1194_v27 = vpop.eup %1193 }
 0x1ee   : > { %v828_v26 = vadd.f32 %v827_v25, %v690_v22  ;;  %1078 = vmatpush1.bf16.msra.mxu1 %v1077_v20  ;;  %v1196_v31 = vpop.eup %1195 }
 0x1ef   : > { %1205 = vtanh.f32 %v826_v24 }
 0x1f0   : > { %1207 = vtanh.f32 %v828_v26 }
 0x1f1   : > { %v1198_v36 = vpop.eup %1197 }
 0x1f2   : > { %v1200_v39 = vpop.eup %1199  ;;  %v1081_v40 = vpack.c.bf16 %v1198_v36, %v1194_v27 }
 0x1f3   : > { %v1079_v42 = vpack.c.bf16 %v1200_v39, %v1196_v31 }
 0x1f5   : > { %1080 = vmatprep.subr.bf16.mxu1 %v1079_v42  ;;  %v1202_v44 = vpop.eup %1201 }
 0x1f6   : > { %1082 = vmatpush1.bf16.msra.mxu1 %v1081_v40  ;;  %v1204_v38 = vpop.eup %1203 }
 0x1f9   : > { %v1206_v45 = vpop.eup %1205 }
 0x1fa   : > { %v1208_v28 = vpop.eup %1207  ;;  %v1085_v46 = vpack.c.bf16 %v1206_v45, %v1202_v44 }
 0x1fb   : > { %v1083_v48 = vpack.c.bf16 %v1208_v28, %v1204_v38 }
 0x1fd   : > { %1084 = vmatprep.subr.bf16.mxu1 %v1083_v48 }
 0x1fe   : > { %1086 = vmatpush1.bf16.msra.mxu1 %v1085_v46 }
 0x201   : > { %1046 = vmatmul.mubr.msk.f32.vlgmr.msra.gmra.mrb[0].mxu1 %vm692_vm0, %v338_v49 }
 0x2d4   : > { %v924_v59 = vpop.f32.mrb[0].mxu1 }
 0x2d5   : > { %v925_v29 = vadd.f32 %v924_v59, %v854_v54  ;;  %v926_v52 = vpop.f32.mrb[1].mxu1 }
 0x2d6   : > { %v927_v61 = vadd.f32 %v926_v52, %v854_v54 }
 0x2d8   : > { %v931_v30 = vcombine.low %v925_v29, %v927_v61  ;;  %959 = sbr.rel (!%p1360_p5) target bundleno = 762 (0x2fa), region = 52 }
 0x2da   : > { %v938_v63 = vrot.slane %v931_v30, %v937_v62 }
 0x2dc   : > { %v945_v43 = vrot.slane %v938_v63, %v937_v62 }
 0x2de   : > { %951 = vst.msk [vmem:[%s286_s14] sm:$0x3] %vm949_vm1, %v945_v43 }
 0x2df   : > { %s1671_s16 = smov (!%p962_p11, %s961_s16), 2 }
 0x2e0   : > { %s1607_s18 = sshll.u32 %s1671_s16, 4 }
 0x2e1   : > { %s966_s19 = ssub.s32 32, %s1607_s18 }
 0x2e2   : > { %967 = vsyncadd %s1602_s15, %s966_s19  ;;  %p1050_p12 = scmp.ne.s32.totalorder %s1607_s18, 0  ;;  %s1054_s20 = sshll.u32 %s1343_s6, 5 }
 0x2e3   : > { %s1616_s12 = scalar_lea.hbm %s1663_s7, %s1054_s20  ;;  %s972_s23 = sshll.u32 %s286_s14, 4  ;;  %s973_s23 = int_to_ptr.vmem [resolvable:$true] %s972_s23 }
 0x2e4   : > { %s1209_s17 = scalar_lea.vmem %s973_s23, %s1607_s18  ;;  %s1278_s24 = smov [#allocation3]  }
 0x2e5   : > { %p1210_p13 = scmp.ne.s32.totalorder %s973_s23, %s1209_s17  ;;  %s1213_s25 = sshll.u32 %s1278_s24, 4  ;;  %s1214_s25 = int_to_ptr.vmem [resolvable:$false] %s1213_s25 }
 0x2e6   : > { %s1215_s30 = scalar_lea.vmem %s1214_s25, 64  ;;  %p1216_p2 = scmp.lt.s32.totalorder %s973_s23, %s1214_s25 }
 0x2e7   : > { %p1211_p0 = pnand %p1210_p13, %p1050_p12  ;;  %p1217_p3 = scmp.lt.s32.totalorder %s1215_s30, %s1209_s17 }
 0x2e9   : > { %p1212_p1 = pneg %p1211_p0  ;;  %p1218_p4 = por %p1217_p3, %p1216_p2 }
 0x2eb   : > { %p1219_p5 = pnand %p1218_p4, %p1212_p1 }
 0x2ed   : > { %1222 = shalt.err (!%p1219_p5)
}
 0x2ee   : > { %s1223_s6 = scalar_lea.hbm %s1616_s12, %s1607_s18  ;;  %s1227_s14 = scalar_lea.hbm %s1663_s7, 48 }
 0x2ef   : > { %p1224_p7 = scmp.ne.s32.totalorder %s1616_s12, %s1223_s6  ;;  %p1228_p10 = scmp.lt.u32.totalorder %s1616_s12, %s1663_s7 }
 0x2f0   : > { %p1229_p11 = scmp.lt.u32.totalorder %s1227_s14, %s1223_s6  ;;  %p1231_p0 = scmp.lt.u32.totalorder %s1223_s6, %s1616_s12 }
 0x2f1   : > { %p1225_p8 = pnand %p1224_p7, %p1050_p12 }
 0x2f2   : > { %p1230_p13 = por %p1229_p11, %p1228_p10 }
 0x2f3   : > { %p1226_p9 = pneg %p1225_p8 }
 0x2f4   : > { %p1232_p1 = por %p1231_p0, %p1230_p13 }
 0x2f6   : > { %p1233_p2 = pnand %p1232_p1, %p1226_p9 }
 0x2f8   : > { %1236 = shalt.err (!%p1233_p2)
}
 0x2f9   : > { %975 = dma.vmem_to_hbm [thread:$0]  (%p1050_p12), %s973_s23, %s1607_s18, %s1616_s12, %s1602_s15  }
 0x2fa PF: > { %p1092_p3 = scmp.ge.s32.totalorder %s1271_s29, 2  ;;  %s984_s20 = sand.u32 1, %s1259_s26  }
 0x2fb   : > { %s985_s21 = scalar_lea.sflag [#allocation4], %s984_s20 }
 0x2fc   : > { %p1089_p4 = pnand %p1092_p3, %p1364_p6 }
 0x2fe   : > { %1254 = dma.done.wait (!%p1089_p4), %s985_s21, 32  }
 0x2ff   : > { %1256 = vsyncadd (!%p1089_p4), %s985_s21, 4294967264  ;;  %p19_p5 = scmp.ge.s32.totalorder %s1347_s8, 4   ;;  %s1666_s26 = smov %s1263_s27 }
 0x300   : > { %s1667_s27 = smov %s1267_s28  ;;  %s1668_s28 = smov %s1358_s11 }
 0x301   : > { %s1669_s29 = smov %s1347_s8  ;;  %21 = sbr.rel (!%p19_p5) target bundleno = 6 (0x6), region = 83 }
 0x308   :  { %990 = vsyncpa [#allocation4], 1 }
 0x309   :  { %992 = vsyncpa [#allocation4 + $0x1], 1 }

</bundles_post_ra>
